<compile_context>
chip_gen: v7x
topology: tpu7x:2x2x1
jax: 0.10.0
libtpu: 0.0.40
codegen_flags: <defaults>
</compile_context>

<pallas_src>
import functools

import jax
import jax.numpy as jnp
import numpy as np
from jax.experimental import pallas as pl
from jax.experimental.pallas import tpu as pltpu


def _conv2d_rowmm_kernel(lhs_ref, w_ref, b_ref, o_ref):
    """One grid step = one strip of output rows (rows = flattened (batch, out_row)).

    lhs_ref: (1, TM, Kd)   KH-shift-fused image rows, Kd = KH*W*Cin (aligned tile)
    w_ref:   (Kd, N)       banded row operator, N = Wo_pad*Cout (multiple of 128)
    b_ref:   (1, N)        bias tiled over the Wo_pad output columns
    o_ref:   (1, TM, N)    lane-dense output strip
    """
    acc = jnp.dot(lhs_ref[0], w_ref[...], preferred_element_type=jnp.float32)
    o_ref[0] = (acc + b_ref[...]).astype(o_ref.dtype)


def _tensorcores_per_chip():
    """v7x has 2 TensorCores per chip; v5e/v6e have 1.  Conservative fallback: 1."""
    try:
        kind = jax.devices()[0].device_kind.lower()
    except Exception:
        return 1
    return 2 if "v7" in kind else 1


def init_conv2d_params(weight, bias, H, W, compute_dtype=None):
    """Precompute weight-dependent operands ONCE (hoisted out of the forward path).

    weight: (KH, KW, Cin, Cout) HWIO layout; bias: (Cout,).
    Returns (wrow, bias_t, meta) with
      wrow[kh*W*Cin + j*Cin + ci, wo*Cout + co] = weight[kh, j - wo, ci, co]
    (zero outside the band and in the padded wo columns).
    """
    KH, KW, Cin, Cout = weight.shape
    Ho, Wo = H - KH + 1, W - KW + 1

    # Pad the output lane dim Wo*Cout up to a multiple of 128 so the kernel's
    # stores are unmasked full-lane vst; pad columns are sliced off afterwards.
    n_raw = Wo * Cout
    n_pad = pl.cdiv(n_raw, 128) * 128
    Wo_pad = n_pad // Cout if n_pad % Cout == 0 else Wo
    N = Wo_pad * Cout

    if compute_dtype is not None:       # e.g. jnp.bfloat16 on v6e/v7x at scale
        weight = weight.astype(compute_dtype)

    jj = jnp.arange(W)[None, :, None]       # input column j
    ww = jnp.arange(Wo_pad)[None, None, :]  # output column wo (incl. padding)
    kk = jnp.arange(KW)[:, None, None]      # kernel tap kw
    place = ((jj == ww + kk) & (ww < Wo)).astype(weight.dtype)    # (KW, W, Wo_pad)
    wrow = jnp.einsum('kjw,hkio->hjiwo', place, weight)           # (KH, W, Cin, Wo_pad, Cout)
    wrow = wrow.reshape(KH * W * Cin, N)
    bias_t = jnp.tile(bias.astype(jnp.float32), Wo_pad).reshape(1, N)

    meta = dict(KH=KH, KW=KW, Cin=Cin, Cout=Cout, Ho=Ho, Wo=Wo, Wo_pad=Wo_pad, N=N)
    return wrow, bias_t, meta


@functools.partial(jax.jit,
                   static_argnames=("KH", "KW", "Cout", "Wo_pad", "num_blocks"))
def conv2d_forward(x, wrow, bias_t, *, KH, KW, Cout, Wo_pad, num_blocks):
    """Equivalent of Conv(d=2, Cin, Cout, K).forward on channels-last input.

    x: (B, H, W, Cin); returns (B, Ho, Wo, Cout), Ho=H-KH+1, Wo=W-KW+1
    (stride=1, no padding, dilation=1, groups=1, bias=True).
    """
    B, H, W, Cin = x.shape
    Ho, Wo = H - KH + 1, W - KW + 1
    Kd = KH * W * Cin
    N = Wo_pad * Cout
    out_dtype = x.dtype

    # ---- wrapper-side layout plumbing (no compute) ----
    # Fuse the KH row-shift into the contraction axis so the in-kernel LHS is a
    # single aligned tile and the whole conv is one matmul of depth Kd per strip.
    x3 = x.reshape(B, H, W * Cin)
    lhs = jnp.concatenate([x3[:, kh:kh + Ho, :] for kh in range(KH)], axis=-1)  # (B,Ho,Kd)

    M = B * Ho
    G = num_blocks if (num_blocks >= 1 and M % num_blocks == 0) else 1
    TM = M // G
    lhs3 = lhs.reshape(G, TM, Kd)

    flops = 2 * M * Kd * N
    bytes_accessed = (lhs3.size * lhs3.dtype.itemsize
                      + wrow.size * wrow.dtype.itemsize
                      + bias_t.size * bias_t.dtype.itemsize
                      + M * N * jnp.dtype(out_dtype).itemsize)

    out3 = pl.pallas_call(
        _conv2d_rowmm_kernel,
        out_shape=jax.ShapeDtypeStruct((G, TM, N), out_dtype),
        grid_spec=pltpu.PrefetchScalarGridSpec(
            num_scalar_prefetch=0,
            grid=(G,),
            in_specs=[
                pl.BlockSpec((1, TM, Kd), lambda g: (g, 0, 0)),
                pl.BlockSpec((Kd, N), lambda g: (0, 0)),
                pl.BlockSpec((1, N), lambda g: (0, 0)),
            ],
            out_specs=pl.BlockSpec((1, TM, N), lambda g: (g, 0, 0)),
        ),
        compiler_params=pltpu.CompilerParams(
            dimension_semantics=("parallel",)),
        cost_estimate=pl.CostEstimate(flops=flops, transcendentals=0,
                                      bytes_accessed=bytes_accessed),
    )(lhs3, wrow, bias_t)

    # Rows are (b, ho)-major/minor; drop the lane-padding columns.
    return out3.reshape(B, Ho, Wo_pad, Cout)[:, :, :Wo, :]


if __name__ == "__main__":
    # Small shapes consistent with the module: batch=2, spatial=16x16,
    # in_channels=4, out_channels=8, kernel_size=3 (channels-last input).
    B, H, W, Cin, Cout, K = 2, 16, 16, 4, 8, 3

    key = jax.random.PRNGKey(0)
    kx, kw, kb = jax.random.split(key, 3)
    x = jax.random.normal(kx, (B, H, W, Cin), dtype=jnp.float32)
    # Deterministic synthetic parameters (shapes match nn.Conv2d(4, 8, 3), HWIO).
    weight = jax.random.normal(kw, (K, K, Cin, Cout), dtype=jnp.float32) * (
        1.0 / np.sqrt(Cin * K * K))
    bias = jax.random.normal(kb, (Cout,), dtype=jnp.float32) * 0.1

    # Weight-dependent operands built once (hoisted out of the forward path).
    wrow, bias_t, meta = init_conv2d_params(weight, bias, H, W)

    num_blocks = _tensorcores_per_chip()          # 2 on v7x, else 1 (grid collapse)
    if (B * meta["Ho"]) % num_blocks != 0:
        num_blocks = 1

    out = conv2d_forward(x, wrow, bias_t,
                         KH=meta["KH"], KW=meta["KW"], Cout=meta["Cout"],
                         Wo_pad=meta["Wo_pad"], num_blocks=num_blocks)
    out = jax.block_until_ready(out)

    # Reference: XLA conv in the same (NHWC, HWIO) convention (cross-correlation,
    # matching PyTorch Conv2d semantics after the wrapper's channel moves).
    ref = jax.lax.conv_general_dilated(
        x, weight, window_strides=(1, 1), padding="VALID",
        dimension_numbers=("NHWC", "HWIO", "NHWC")) + bias[None, None, None, :]

    np.testing.assert_allclose(np.asarray(out), np.asarray(ref), rtol=1e-4, atol=1e-4)
    assert out.shape == (B, H - K + 1, W - K + 1, Cout)
    print("KERNEL_OK")
</pallas_src>

<mosaic_0001>
module attributes {stable_mosaic.version = 11 : i64} {
  func.func @_conv2d_rowmm_kernel(%arg0: i32, %arg1: memref<1x28x192xf32, #tpu.memory_space<vmem>>, %arg2: memref<192x128xf32, #tpu.memory_space<vmem>>, %arg3: memref<1x128xf32, #tpu.memory_space<vmem>>, %arg4: memref<1x28x128xf32, #tpu.memory_space<vmem>>) attributes {dimension_semantics = [#tpu.dimension_semantics<parallel>], iteration_bounds = array<i64: 1>, scalar_prefetch = 0 : i64, scratch_operands = 0 : i64, tpu.core_type = #tpu.core_type<tc>, window_params = [{transform_indices = @transform_0, window_bounds = array<i64: 1, 28, 192>}, {pipeline_mode = #tpu.pipeline_mode<synchronous>, transform_indices = @transform_1, window_bounds = array<i64: 192, 128>}, {pipeline_mode = #tpu.pipeline_mode<synchronous>, transform_indices = @transform_2, window_bounds = array<i64: 1, 128>}, {transform_indices = @transform_3, window_bounds = array<i64: 1, 28, 128>}]} {
    %c0 = arith.constant 0 : index
    %c0_0 = arith.constant 0 : index
    %c0_1 = arith.constant 0 : index
    %0 = vector.load %arg1[%c0, %c0_0, %c0_1] : memref<1x28x192xf32, #tpu.memory_space<vmem>>, vector<1x28x192xf32>
    %1 = vector.shape_cast %0 : vector<1x28x192xf32> to vector<28x192xf32>
    %c0_2 = arith.constant 0 : index
    %c0_3 = arith.constant 0 : index
    %2 = vector.load %arg2[%c0_2, %c0_3] : memref<192x128xf32, #tpu.memory_space<vmem>>, vector<192x128xf32>
    %cst = arith.constant dense<0.000000e+00> : vector<28x128xf32>
    %3 = tpu.matmul %1, %2, %cst {dimension_numbers = #tpu.dot_dimension_numbers<[1], [0], [0], [1], [0, 0, 1, 1], [], []>} : vector<28x192xf32>, vector<192x128xf32>, vector<28x128xf32> -> vector<28x128xf32>
    %c0_4 = arith.constant 0 : index
    %c0_5 = arith.constant 0 : index
    %4 = vector.load %arg3[%c0_4, %c0_5] : memref<1x128xf32, #tpu.memory_space<vmem>>, vector<1x128xf32>
    %5 = vector.broadcast %4 : vector<1x128xf32> to vector<28x128xf32>
    %6 = arith.addf %3, %5 : vector<28x128xf32>
    %c0_6 = arith.constant 0 : index
    %c0_7 = arith.constant 0 : index
    %c0_8 = arith.constant 0 : index
    %7 = vector.load %arg4[%c0_6, %c0_7, %c0_8] : memref<1x28x128xf32, #tpu.memory_space<vmem>>, vector<1x28x128xf32>
    %8 = vector.shape_cast %7 : vector<1x28x128xf32> to vector<28x128xf32>
    %9 = vector.shape_cast %6 : vector<28x128xf32> to vector<1x28x128xf32>
    tpu.vector_store %arg4[%c0_6, %c0_7, %c0_8], %9 {strides = array<i32>} : memref<1x28x128xf32, #tpu.memory_space<vmem>>, vector<1x28x128xf32>,
    return
  }
  func.func @transform_0(%arg0: i32) -> (i32, i32, i32) {
    %c0_i32 = arith.constant 0 : i32
    %c0_i32_0 = arith.constant 0 : i32
    %c0_i32_1 = arith.constant 0 : i32
    return %arg0, %c0_i32, %c0_i32_0 : i32, i32, i32
  }
  func.func @transform_1(%arg0: i32) -> (i32, i32) {
    %c0_i32 = arith.constant 0 : i32
    %c0_i32_0 = arith.constant 0 : i32
    %c0_i32_1 = arith.constant 0 : i32
    return %c0_i32, %c0_i32_0 : i32, i32
  }
  func.func @transform_2(%arg0: i32) -> (i32, i32) {
    %c0_i32 = arith.constant 0 : i32
    %c0_i32_0 = arith.constant 0 : i32
    %c0_i32_1 = arith.constant 0 : i32
    return %c0_i32, %c0_i32_0 : i32, i32
  }
  func.func @transform_3(%arg0: i32) -> (i32, i32, i32) {
    %c0_i32 = arith.constant 0 : i32
    %c0_i32_0 = arith.constant 0 : i32
    %c0_i32_1 = arith.constant 0 : i32
    return %arg0, %c0_i32, %c0_i32_0 : i32, i32, i32
  }
}

</mosaic_0001>

<bundles_post_ra>
// kernel: conv2d_forward.1
= control target key start
LH: loop header
LB: loop body
LE: loop exit
PB: predicated region body
PF: predicated region fallthrough
CT: control target
= control target key end

     0   :  { %v225_v0 = vmov 0.0|0.0   ;;  %vm53_vm0 = vcmask 523264   ;;  %s385_s1 = inlined_call_operand.vmem [shape: f32[192,128], index: 1, kind: input, shape index: {}]   ;;  %s386_s0 = inlined_call_operand.vmem [shape: f32[1,28,192], index: 0, kind: input, shape index: {}]   ;;  %s387_s2 = inlined_call_operand.vmem [shape: f32[1,128], index: 2, kind: input, shape index: {}]   ;;  %s388_s3 = inlined_call_operand.vmem [shape: f32[1,28,128], index: 3, kind: output, shape index: {}]  }
   0x1   :  { %164 = vmatprep.subr.bf16.mxu0 %v225_v0  ;;  %200 = vmatprep.subr.bf16.mxu1 %v225_v0  ;;  %v22_v1 = vld [vmem:[%s385_s1] sm:$0xff]  ;;  %v23_v2 = vld [vmem:[%s385_s1 + $0x8] sm:$0xff]  ;;  %v24_v3 = vld [vmem:[%s385_s1 + $0x10] sm:$0xff] }
   0x2   :  { %v165_v4 = vpack.c.bf16 %v23_v2, %v22_v1  ;;  %v25_v5 = vld [vmem:[%s385_s1 + $0x18] sm:$0xff]  ;;  %v26_v7 = vld [vmem:[%s385_s1 + $0x20] sm:$0xff]  ;;  %v27_v8 = vld [vmem:[%s385_s1 + $0x28] sm:$0xff] }
   0x3   :  { %v168_v6 = vpack.c.bf16 %v25_v5, %v24_v3  ;;  %v171_v9 = vpack.c.bf16 %v27_v8, %v26_v7  ;;  %v28_v10 = vld [vmem:[%s385_s1 + $0x30] sm:$0xff]  ;;  %v29_v11 = vld [vmem:[%s385_s1 + $0x38] sm:$0xff]  ;;  %v15_v12 = vld [vmem:[%s386_s0 + $0x8] sm:$0xff] }
   0x4   :  { %166 = vmatpush1.bf16.msra.mxu0 %v165_v4  ;;  %212 = vmatpush1.bf16.msra.mxu1 %v165_v4  ;;  %v19_v13 = vld [vmem:[%s386_s0 + $0x28] sm:$0xff]  ;;  %v174_v14 = vpack.c.bf16 %v29_v11, %v28_v10  ;;  %v30_v15 = vld [vmem:[%s385_s1 + $0x40] sm:$0xff]  ;;  %v32_v18 = vld [vmem:[%s385_s1 + $0x50] sm:$0xff] }
   0x5   :  { %167 = vmatprep.subr.bf16.mxu0 %v225_v0  ;;  %201 = vmatprep.subr.bf16.mxu1 %v225_v0  ;;  %v31_v16 = vld [vmem:[%s385_s1 + $0x48] sm:$0xff]  ;;  %v33_v19 = vld [vmem:[%s385_s1 + $0x58] sm:$0xff]  ;;  %v34_v21 = vld [vmem:[%s385_s1 + $0x60] sm:$0xff] }
   0x6   :  { %160 = vmatprep.mubr.msk.f32.mxu0 %vm53_vm0, %v15_v12  ;;  %162 = vmatprep.mubr.msk.f32.mxu1 %vm53_vm0, %v19_v13  ;;  %v177_v17 = vpack.c.bf16 %v31_v16, %v30_v15  ;;  %v180_v20 = vpack.c.bf16 %v33_v19, %v32_v18  ;;  %v35_v22 = vld [vmem:[%s385_s1 + $0x68] sm:$0xff]  ;;  %v36_v24 = vld [vmem:[%s385_s1 + $0x70] sm:$0xff]  ;;  %v37_v25 = vld [vmem:[%s385_s1 + $0x78] sm:$0xff] }
   0x7   :  { %v183_v23 = vpack.c.bf16 %v35_v22, %v34_v21  ;;  %v186_v26 = vpack.c.bf16 %v37_v25, %v36_v24  ;;  %v38_v27 = vld [vmem:[%s385_s1 + $0x80] sm:$0xff]  ;;  %v39_v28 = vld [vmem:[%s385_s1 + $0x88] sm:$0xff]  ;;  %v40_v30 = vld [vmem:[%s385_s1 + $0x90] sm:$0xff] }
   0x8   :  { %169 = vmatpush1.bf16.msra.mxu0 %v168_v6  ;;  %213 = vmatpush1.bf16.msra.mxu1 %v168_v6  ;;  %v189_v29 = vpack.c.bf16 %v39_v28, %v38_v27  ;;  %v41_v31 = vld [vmem:[%s385_s1 + $0x98] sm:$0xff]  ;;  %v42_v33 = vld [vmem:[%s385_s1 + $0xa0] sm:$0xff]  ;;  %v43_v34 = vld [vmem:[%s385_s1 + $0xa8] sm:$0xff] }
   0x9   :  { %170 = vmatprep.subr.bf16.mxu0 %v225_v0  ;;  %202 = vmatprep.subr.bf16.mxu1 %v225_v0  ;;  %v192_v32 = vpack.c.bf16 %v41_v31, %v40_v30  ;;  %v195_v35 = vpack.c.bf16 %v43_v34, %v42_v33  ;;  %v44_v36 = vld [vmem:[%s385_s1 + $0xb0] sm:$0xff]  ;;  %v45_v37 = vld [vmem:[%s385_s1 + $0xb8] sm:$0xff]  ;;  %v14_v39 = vld [vmem:[%s386_s0] sm:$0xff] }
   0xa   :  { %v198_v38 = vpack.c.bf16 %v45_v37, %v44_v36  ;;  %v18_v40 = vld [vmem:[%s386_s0 + $0x20] sm:$0xff]  ;;  %v17_v41 = vld [vmem:[%s386_s0 + $0x18] sm:$0xff]  ;;  %v16_v43 = vld [vmem:[%s386_s0 + $0x10] sm:$0xff] }
   0xb   :  { %v21_v42 = vld [vmem:[%s386_s0 + $0x38] sm:$0xf]  ;;  %v20_v44 = vld [vmem:[%s386_s0 + $0x30] sm:$0xf]  ;;  %v159_v45 = vld [vmem:[%s387_s2] ss:$0 sm:$0xff] }
   0xc   :  { %172 = vmatpush1.bf16.msra.mxu0 %v171_v9  ;;  %214 = vmatpush1.bf16.msra.mxu1 %v171_v9 }
   0xd   :  { %173 = vmatprep.subr.bf16.mxu0 %v225_v0  ;;  %203 = vmatprep.subr.bf16.mxu1 %v225_v0 }
  0x10   :  { %175 = vmatpush1.bf16.msra.mxu0 %v174_v14  ;;  %215 = vmatpush1.bf16.msra.mxu1 %v174_v14 }
  0x11   :  { %176 = vmatprep.subr.bf16.mxu0 %v225_v0  ;;  %204 = vmatprep.subr.bf16.mxu1 %v225_v0 }
  0x14   :  { %178 = vmatpush1.bf16.msra.mxu0 %v177_v17  ;;  %216 = vmatpush1.bf16.msra.mxu1 %v177_v17 }
  0x15   :  { %179 = vmatprep.subr.bf16.mxu0 %v225_v0  ;;  %205 = vmatprep.subr.bf16.mxu1 %v225_v0 }
  0x18   :  { %181 = vmatpush1.bf16.msra.mxu0 %v180_v20  ;;  %217 = vmatpush1.bf16.msra.mxu1 %v180_v20 }
  0x19   :  { %182 = vmatprep.subr.bf16.mxu0 %v225_v0  ;;  %206 = vmatprep.subr.bf16.mxu1 %v225_v0 }
  0x1c   :  { %184 = vmatpush1.bf16.msra.mxu0 %v183_v23  ;;  %218 = vmatpush1.bf16.msra.mxu1 %v183_v23 }
  0x1d   :  { %185 = vmatprep.subr.bf16.mxu0 %v225_v0  ;;  %207 = vmatprep.subr.bf16.mxu1 %v225_v0 }
  0x20   :  { %187 = vmatpush1.bf16.msra.mxu0 %v186_v26  ;;  %219 = vmatpush1.bf16.msra.mxu1 %v186_v26 }
  0x21   :  { %188 = vmatprep.subr.bf16.mxu0 %v225_v0  ;;  %208 = vmatprep.subr.bf16.mxu1 %v225_v0 }
  0x24   :  { %190 = vmatpush1.bf16.msra.mxu0 %v189_v29  ;;  %220 = vmatpush1.bf16.msra.mxu1 %v189_v29 }
  0x25   :  { %191 = vmatprep.subr.bf16.mxu0 %v225_v0  ;;  %209 = vmatprep.subr.bf16.mxu1 %v225_v0 }
  0x28   :  { %193 = vmatpush1.bf16.msra.mxu0 %v192_v32  ;;  %221 = vmatpush1.bf16.msra.mxu1 %v192_v32 }
  0x29   :  { %194 = vmatprep.subr.bf16.mxu0 %v225_v0  ;;  %210 = vmatprep.subr.bf16.mxu1 %v225_v0 }
  0x2c   :  { %196 = vmatpush1.bf16.msra.mxu0 %v195_v35  ;;  %222 = vmatpush1.bf16.msra.mxu1 %v195_v35 }
  0x2d   :  { %197 = vmatprep.subr.bf16.mxu0 %v225_v0  ;;  %211 = vmatprep.subr.bf16.mxu1 %v225_v0 }
  0x30   :  { %199 = vmatpush1.bf16.msra.mxu0 %v198_v38  ;;  %223 = vmatpush1.bf16.msra.mxu1 %v198_v38 }
  0x33   :  { %131 = vmatmul.mubr.f32.vlgmr.msra.gmra.mrb[0].mxu0 %v14_v39  ;;  %141 = vmatmul.mubr.f32.vlgmr.msra.gmra.mrb[0].mxu1 %v18_v40 }
  0x34   :  { %161 = vmatprep.mubr.msk.f32.mxu0 %vm53_vm0, %v17_v41  ;;  %163 = vmatprep.mubr.msk.f32.mxu1 %vm53_vm0, %v21_v42 }
  0x37   :  { %136 = vmatmul.mubr.f32.gmra.mrb[2].mxu0 %v16_v43  ;;  %146 = vmatmul.mubr.f32.gmra.mrb[2].mxu1 %v20_v44 }
 0x106   :  { %v132_v46 = vpop.f32.mrb[0].mxu0  ;;  %v142_v47 = vpop.f32.mrb[0].mxu1 }
 0x107   :  { %v133_v48 = vadd.f32 %v159_v45, %v132_v46  ;;  %v143_v49 = vadd.f32 %v159_v45, %v142_v47  ;;  %v134_v50 = vpop.f32.mrb[1].mxu0  ;;  %v144_v51 = vpop.f32.mrb[1].mxu1 }
 0x109   :  { %151 = vst [vmem:[%s388_s3] sm:$0xff] %v133_v48  ;;  %153 = vst [vmem:[%s388_s3 + $0x10] sm:$0xff] %v143_v49 }
 0x10a   :  { %v137_v52 = vpop.f32.mrb[2].mxu0  ;;  %v147_v53 = vpop.f32.mrb[2].mxu1 }
 0x10b   :  { %v138_v54 = vadd.f32 %v159_v45, %v137_v52  ;;  %v148_v55 = vadd.f32 %v159_v45, %v147_v53  ;;  %v139_v56 = vpop.f32.mrb[3].mxu0  ;;  %v149_v57 = vpop.f32.mrb[3].mxu1 }
 0x10d   :  { %152 = vst [vmem:[%s388_s3 + $0x8] sm:$0xff] %v138_v54  ;;  %154 = vst [vmem:[%s388_s3 + $0x18] sm:$0xf] %v148_v55 }

</bundles_post_ra>
